<compile_context>
chip_gen: v7x
topology: tpu7x:2x2x1
jax: 0.10.0
libtpu: 0.0.40
codegen_flags: <defaults>
</compile_context>

<pallas_src>
import functools
from dataclasses import dataclass

import numpy as np
import jax
import jax.numpy as jnp
from jax.experimental import pallas as pl
from jax.experimental.pallas import tpu as pltpu


# ----------------------------------------------------------------------------
# Static layer plan
# ----------------------------------------------------------------------------

def _round_up(x, m):
    return ((x + m - 1) // m) * m


@dataclass(frozen=True)
class LayerPlan:
    cin: int
    cout: int
    h_in: int      # input spatial height of this layer
    w_in: int
    hp: int        # pooled output spatial height
    wp: int
    p: int         # valid pooled rows = N * hp * wp
    p_pad: int     # p rounded up to a multiple of 8 (sublane alignment)


def build_plan(batch, img_h, img_w, channels):
    plans = []
    h, w = img_h, img_w
    for cin, cout in zip(channels[:-1], channels[1:]):
        ho, wo = h - 2, w - 2            # 3x3 valid conv
        hp, wp = ho // 2, wo // 2        # MaxPool2d(2), floor mode
        p = batch * hp * wp
        plans.append(LayerPlan(cin, cout, h, w, hp, wp, p, _round_up(p, 8)))
        h, w = hp, wp
    return tuple(plans)


# ----------------------------------------------------------------------------
# Host-side constant: one-hot patch-gather matrices for layers >= 1
# ----------------------------------------------------------------------------

def build_gather_matrix(batch, prev: LayerPlan, cur: LayerPlan):
    """g[u, d*p_pad + r, src] = 1 selects, for conv tap u=(kh,kw) and pool
    offset d=(dh,dw), the previous-layer row feeding pooled output row
    r = (n, ph, pw).  Padding rows of the previous activation are never
    selected; padding rows of the output stay all-zero."""
    g = np.zeros((9, 4 * cur.p_pad, prev.p_pad), np.float32)
    for kh in range(3):
        for kw in range(3):
            u = kh * 3 + kw
            for dh in range(2):
                for dw in range(2):
                    d = dh * 2 + dw
                    for n in range(batch):
                        for ph in range(cur.hp):
                            for pw in range(cur.wp):
                                row = (d * cur.p_pad
                                       + n * cur.hp * cur.wp + ph * cur.wp + pw)
                                sh = 2 * ph + dh + kh
                                sw = 2 * pw + dw + kw
                                src = n * cur.h_in * cur.w_in + sh * cur.w_in + sw
                                g[u, row, src] = 1.0
    return jnp.asarray(g)


# ----------------------------------------------------------------------------
# Wrapper-side glue: im2col patches of the raw input (single XLA fusion)
# ----------------------------------------------------------------------------

def build_layer0_patches(x_nhwc, lp: LayerPlan):
    """(N, H, W, Cin) -> (4*p_pad, 9*Cin); rows ordered (d, n, ph, pw)."""
    n, h, w, c = x_nhwc.shape
    ho, wo = h - 2, w - 2
    cols = [x_nhwc[:, kh:kh + ho, kw:kw + wo, :]
            for kh in range(3) for kw in range(3)]
    xim = jnp.concatenate(cols, axis=-1)                 # (n, ho, wo, 9c)
    xim = xim[:, :2 * lp.hp, :2 * lp.wp, :]              # floor-pool crop
    k = 9 * c
    xim = xim.reshape(n, lp.hp, 2, lp.wp, 2, k)
    xim = xim.transpose(2, 4, 0, 1, 3, 5)                # (2, 2, n, hp, wp, k)
    xim = xim.reshape(4, n * lp.hp * lp.wp, k)
    pad = lp.p_pad - lp.p
    if pad:
        xim = jnp.pad(xim, ((0, 0), (0, pad), (0, 0)))
    return xim.reshape(4 * lp.p_pad, k)


# ----------------------------------------------------------------------------
# Fused Pallas kernel: all conv layers, VMEM resident
# ----------------------------------------------------------------------------

def _encoder_kernel(plans, *refs):
    """refs = [xp0, w0, b0, (G_l, w_l, b_l) for l >= 1 ..., out]."""
    out_ref = refs[-1]
    idx = 0
    act = None                                    # previous activation (p_pad, cout)
    for li, lp in enumerate(plans):
        if li == 0:
            patches = refs[idx][...]; idx += 1    # (4*p_pad, 9*cin)
            w = refs[idx][...]; idx += 1          # (9*cin, cout)
            b = refs[idx][...]; idx += 1          # (1, cout)
            y = jnp.dot(patches, w, preferred_element_type=jnp.float32)
        else:
            g_ref = refs[idx]; idx += 1           # (9, 4*p_pad, p_pad_prev)
            w = refs[idx][...]; idx += 1          # (9*cin, cout)
            b = refs[idx][...]; idx += 1          # (1, cout)
            y = None
            for u in range(9):                    # 9 conv taps, unrolled
                gathered = jnp.dot(g_ref[u], act,
                                   preferred_element_type=jnp.float32)   # (4*p_pad, cin)
                term = jnp.dot(gathered, w[u * lp.cin:(u + 1) * lp.cin, :],
                               preferred_element_type=jnp.float32)       # (4*p_pad, cout)
                y = term if y is None else y + term
        # Max over the 4 pool-window positions (sublane-aligned row blocks),
        # THEN a single shared bias-add + tanh (exact: tanh is monotone).
        pp = lp.p_pad
        m = jnp.maximum(jnp.maximum(y[0 * pp:1 * pp], y[1 * pp:2 * pp]),
                        jnp.maximum(y[2 * pp:3 * pp], y[3 * pp:4 * pp]))
        act = jnp.tanh(m + b)                     # (p_pad, cout)
    out_ref[...] = act


def image_encoder_forward(obs_nchw, params, plans):
    """obs_nchw: (N, C0, H, W) float32 -> flattened features (N, C_last*Hp*Wp)."""
    n = obs_nchw.shape[0]
    x_nhwc = jnp.transpose(obs_nchw, (0, 2, 3, 1))
    xp0 = build_layer0_patches(x_nhwc, plans[0])

    inputs = [xp0]
    for li in range(len(plans)):
        if li > 0:
            inputs.append(params["gather"][li - 1])
        inputs.append(params["w"][li])
        inputs.append(params["b"][li])

    last = plans[-1]
    flops = 2 * 4 * plans[0].p_pad * (9 * plans[0].cin) * plans[0].cout
    for prev, cur in zip(plans[:-1], plans[1:]):
        flops += 2 * 9 * (4 * cur.p_pad) * prev.p_pad * cur.cin
        flops += 2 * 9 * (4 * cur.p_pad) * cur.cin * cur.cout
    transcendentals = sum(p.p_pad * p.cout for p in plans)
    bytes_accessed = 4 * (sum(int(np.prod(a.shape)) for a in inputs)
                          + last.p_pad * last.cout)

    out = pl.pallas_call(
        functools.partial(_encoder_kernel, plans),
        out_shape=jax.ShapeDtypeStruct((last.p_pad, last.cout), jnp.float32),
        in_specs=[pl.BlockSpec(memory_space=pltpu.MemorySpace.VMEM)] * len(inputs),
        out_specs=pl.BlockSpec(memory_space=pltpu.MemorySpace.VMEM),
        cost_estimate=pl.CostEstimate(flops=flops,
                                      transcendentals=transcendentals,
                                      bytes_accessed=bytes_accessed),
    )(*inputs)

    # torch-compatible (NCHW) flatten ordering of the final pooled activation.
    feat = out[:last.p].reshape(n, last.hp, last.wp, last.cout)
    feat = jnp.transpose(feat, (0, 3, 1, 2)).reshape(n, -1)
    return feat


# ----------------------------------------------------------------------------
# Deterministic synthetic parameters (orthogonal conv weights, small biases)
# ----------------------------------------------------------------------------

def _orthogonal(key, shape):
    rows, cols = shape
    a = jax.random.normal(key, (max(rows, cols), min(rows, cols)), dtype=jnp.float32)
    q, r = jnp.linalg.qr(a)
    q = q * jnp.sign(jnp.diagonal(r))
    if rows < cols:
        q = q.T
    return q[:rows, :cols].astype(jnp.float32)


def build_encoder_params(batch, plans, key):
    params = {"w": [], "b": [], "gather": []}
    keys = jax.random.split(key, 2 * len(plans))
    for li, lp in enumerate(plans):
        w = _orthogonal(keys[2 * li], (9 * lp.cin, lp.cout))   # rows: (kh, kw, cin)
        b = 0.1 * jax.random.normal(keys[2 * li + 1], (1, lp.cout), dtype=jnp.float32)
        params["w"].append(w)
        params["b"].append(b)
        if li > 0:
            params["gather"].append(build_gather_matrix(batch, plans[li - 1], lp))
    return params


# ----------------------------------------------------------------------------
# Plain-XLA reference (for a structural correctness check)
# ----------------------------------------------------------------------------

def reference_forward(obs_nchw, params, plans):
    x = jnp.transpose(obs_nchw, (0, 2, 3, 1))                  # NHWC
    for lp, w, b in zip(plans, params["w"], params["b"]):
        k = w.reshape(3, 3, lp.cin, lp.cout)                   # HWIO
        y = jax.lax.conv_general_dilated(
            x, k, window_strides=(1, 1), padding="VALID",
            dimension_numbers=("NHWC", "HWIO", "NHWC"))
        y = jnp.tanh(y + b.reshape(1, 1, 1, lp.cout))
        x = jax.lax.reduce_window(y, -jnp.inf, jax.lax.max,
                                  (1, 2, 2, 1), (1, 2, 2, 1), "VALID")
    n = x.shape[0]
    return jnp.transpose(x, (0, 3, 1, 2)).reshape(n, -1)


# ----------------------------------------------------------------------------
# Demo
# ----------------------------------------------------------------------------

if __name__ == "__main__":
    key = jax.random.PRNGKey(0)
    k_obs, k_params = jax.random.split(key)

    batch, img_h, img_w = 2, 16, 16
    channels = [4, 8, 16]                       # ImageEncoder(channels)

    plans = build_plan(batch, img_h, img_w, channels)
    params = build_encoder_params(batch, plans, k_params)
    obs = jax.random.normal(k_obs, (batch, channels[0], img_h, img_w),
                            dtype=jnp.float32)

    encoder = jax.jit(lambda o, p: image_encoder_forward(o, p, plans))
    feat = jax.block_until_ready(encoder(obs, params))

    last = plans[-1]
    assert feat.shape == (batch, last.cout * last.hp * last.wp), feat.shape
    assert bool(jnp.all(jnp.isfinite(feat)))

    # Structural correctness check vs. plain XLA (loose tolerance: MXU matmul
    # and XLA conv accumulate in different orders / precisions).
    ref = jax.block_until_ready(reference_forward(obs, params, plans))
    assert bool(jnp.allclose(feat, ref, atol=5e-2, rtol=5e-2)), (
        float(jnp.max(jnp.abs(feat - ref))))

    print("KERNEL_OK")
</pallas_src>

<mosaic_0001>
module attributes {stable_mosaic.version = 11 : i64} {
  func.func @_encoder_kernel(%arg0: memref<416x36xf32, #tpu.memory_space<vmem>>, %arg1: memref<36x8xf32, #tpu.memory_space<vmem>>, %arg2: memref<1x8xf32, #tpu.memory_space<vmem>>, %arg3: memref<9x32x104xf32, #tpu.memory_space<vmem>>, %arg4: memref<72x16xf32, #tpu.memory_space<vmem>>, %arg5: memref<1x16xf32, #tpu.memory_space<vmem>>, %arg6: memref<8x16xf32, #tpu.memory_space<vmem>>) attributes {dimension_semantics = [], scalar_prefetch = 0 : i64, scratch_operands = 0 : i64, tpu.core_type = #tpu.core_type<tc>} {
    %c0 = arith.constant 0 : index
    %c0_0 = arith.constant 0 : index
    %0 = vector.load %arg0[%c0, %c0_0] : memref<416x36xf32, #tpu.memory_space<vmem>>, vector<416x36xf32>
    %c0_1 = arith.constant 0 : index
    %c0_2 = arith.constant 0 : index
    %1 = vector.load %arg1[%c0_1, %c0_2] : memref<36x8xf32, #tpu.memory_space<vmem>>, vector<36x8xf32>
    %c0_3 = arith.constant 0 : index
    %c0_4 = arith.constant 0 : index
    %2 = vector.load %arg2[%c0_3, %c0_4] : memref<1x8xf32, #tpu.memory_space<vmem>>, vector<1x8xf32>
    %cst = arith.constant dense<0.000000e+00> : vector<416x8xf32>
    %3 = tpu.matmul %0, %1, %cst {dimension_numbers = #tpu.dot_dimension_numbers<[1], [0], [0], [1], [0, 0, 1, 1], [], []>} : vector<416x36xf32>, vector<36x8xf32>, vector<416x8xf32> -> vector<416x8xf32>
    %4 = vector.extract_strided_slice %3 {offsets = [0, 0], sizes = [104, 8], strides = [1, 1]} : vector<416x8xf32> to vector<104x8xf32>
    %5 = vector.extract_strided_slice %3 {offsets = [104, 0], sizes = [104, 8], strides = [1, 1]} : vector<416x8xf32> to vector<104x8xf32>
    %6 = arith.maximumf %4, %5 : vector<104x8xf32>
    %7 = vector.extract_strided_slice %3 {offsets = [208, 0], sizes = [104, 8], strides = [1, 1]} : vector<416x8xf32> to vector<104x8xf32>
    %8 = vector.extract_strided_slice %3 {offsets = [312, 0], sizes = [104, 8], strides = [1, 1]} : vector<416x8xf32> to vector<104x8xf32>
    %9 = arith.maximumf %7, %8 : vector<104x8xf32>
    %10 = arith.maximumf %6, %9 : vector<104x8xf32>
    %11 = vector.broadcast %2 : vector<1x8xf32> to vector<104x8xf32>
    %12 = arith.addf %10, %11 : vector<104x8xf32>
    %13 = math.tanh %12 : vector<104x8xf32>
    %c0_5 = arith.constant 0 : index
    %c0_6 = arith.constant 0 : index
    %14 = vector.load %arg4[%c0_5, %c0_6] : memref<72x16xf32, #tpu.memory_space<vmem>>, vector<72x16xf32>
    %c0_7 = arith.constant 0 : index
    %c0_8 = arith.constant 0 : index
    %15 = vector.load %arg5[%c0_7, %c0_8] : memref<1x16xf32, #tpu.memory_space<vmem>>, vector<1x16xf32>
    %c0_9 = arith.constant 0 : index
    %c0_10 = arith.constant 0 : index
    %c0_11 = arith.constant 0 : index
    %16 = vector.load %arg3[%c0_9, %c0_10, %c0_11] : memref<9x32x104xf32, #tpu.memory_space<vmem>>, vector<1x32x104xf32>
    %17 = vector.shape_cast %16 : vector<1x32x104xf32> to vector<32x104xf32>
    %cst_12 = arith.constant dense<0.000000e+00> : vector<32x8xf32>
    %18 = tpu.matmul %17, %13, %cst_12 {dimension_numbers = #tpu.dot_dimension_numbers<[1], [0], [0], [1], [0, 0, 1, 1], [], []>} : vector<32x104xf32>, vector<104x8xf32>, vector<32x8xf32> -> vector<32x8xf32>
    %19 = vector.extract_strided_slice %14 {offsets = [0, 0], sizes = [8, 16], strides = [1, 1]} : vector<72x16xf32> to vector<8x16xf32>
    %cst_13 = arith.constant dense<0.000000e+00> : vector<32x16xf32>
    %20 = tpu.matmul %18, %19, %cst_13 {dimension_numbers = #tpu.dot_dimension_numbers<[1], [0], [0], [1], [0, 0, 1, 1], [], []>} : vector<32x8xf32>, vector<8x16xf32>, vector<32x16xf32> -> vector<32x16xf32>
    %c1 = arith.constant 1 : index
    %c0_14 = arith.constant 0 : index
    %c0_15 = arith.constant 0 : index
    %21 = vector.load %arg3[%c1, %c0_14, %c0_15] : memref<9x32x104xf32, #tpu.memory_space<vmem>>, vector<1x32x104xf32>
    %22 = vector.shape_cast %21 : vector<1x32x104xf32> to vector<32x104xf32>
    %cst_16 = arith.constant dense<0.000000e+00> : vector<32x8xf32>
    %23 = tpu.matmul %22, %13, %cst_16 {dimension_numbers = #tpu.dot_dimension_numbers<[1], [0], [0], [1], [0, 0, 1, 1], [], []>} : vector<32x104xf32>, vector<104x8xf32>, vector<32x8xf32> -> vector<32x8xf32>
    %24 = vector.extract_strided_slice %14 {offsets = [8, 0], sizes = [8, 16], strides = [1, 1]} : vector<72x16xf32> to vector<8x16xf32>
    %cst_17 = arith.constant dense<0.000000e+00> : vector<32x16xf32>
    %25 = tpu.matmul %23, %24, %cst_17 {dimension_numbers = #tpu.dot_dimension_numbers<[1], [0], [0], [1], [0, 0, 1, 1], [], []>} : vector<32x8xf32>, vector<8x16xf32>, vector<32x16xf32> -> vector<32x16xf32>
    %26 = arith.addf %20, %25 : vector<32x16xf32>
    %c2 = arith.constant 2 : index
    %c0_18 = arith.constant 0 : index
    %c0_19 = arith.constant 0 : index
    %27 = vector.load %arg3[%c2, %c0_18, %c0_19] : memref<9x32x104xf32, #tpu.memory_space<vmem>>, vector<1x32x104xf32>
    %28 = vector.shape_cast %27 : vector<1x32x104xf32> to vector<32x104xf32>
    %cst_20 = arith.constant dense<0.000000e+00> : vector<32x8xf32>
    %29 = tpu.matmul %28, %13, %cst_20 {dimension_numbers = #tpu.dot_dimension_numbers<[1], [0], [0], [1], [0, 0, 1, 1], [], []>} : vector<32x104xf32>, vector<104x8xf32>, vector<32x8xf32> -> vector<32x8xf32>
    %30 = vector.extract_strided_slice %14 {offsets = [16, 0], sizes = [8, 16], strides = [1, 1]} : vector<72x16xf32> to vector<8x16xf32>
    %cst_21 = arith.constant dense<0.000000e+00> : vector<32x16xf32>
    %31 = tpu.matmul %29, %30, %cst_21 {dimension_numbers = #tpu.dot_dimension_numbers<[1], [0], [0], [1], [0, 0, 1, 1], [], []>} : vector<32x8xf32>, vector<8x16xf32>, vector<32x16xf32> -> vector<32x16xf32>
    %32 = arith.addf %26, %31 : vector<32x16xf32>
    %c3 = arith.constant 3 : index
    %c0_22 = arith.constant 0 : index
    %c0_23 = arith.constant 0 : index
    %33 = vector.load %arg3[%c3, %c0_22, %c0_23] : memref<9x32x104xf32, #tpu.memory_space<vmem>>, vector<1x32x104xf32>
    %34 = vector.shape_cast %33 : vector<1x32x104xf32> to vector<32x104xf32>
    %cst_24 = arith.constant dense<0.000000e+00> : vector<32x8xf32>
    %35 = tpu.matmul %34, %13, %cst_24 {dimension_numbers = #tpu.dot_dimension_numbers<[1], [0], [0], [1], [0, 0, 1, 1], [], []>} : vector<32x104xf32>, vector<104x8xf32>, vector<32x8xf32> -> vector<32x8xf32>
    %36 = vector.extract_strided_slice %14 {offsets = [24, 0], sizes = [8, 16], strides = [1, 1]} : vector<72x16xf32> to vector<8x16xf32>
    %cst_25 = arith.constant dense<0.000000e+00> : vector<32x16xf32>
    %37 = tpu.matmul %35, %36, %cst_25 {dimension_numbers = #tpu.dot_dimension_numbers<[1], [0], [0], [1], [0, 0, 1, 1], [], []>} : vector<32x8xf32>, vector<8x16xf32>, vector<32x16xf32> -> vector<32x16xf32>
    %38 = arith.addf %32, %37 : vector<32x16xf32>
    %c4 = arith.constant 4 : index
    %c0_26 = arith.constant 0 : index
    %c0_27 = arith.constant 0 : index
    %39 = vector.load %arg3[%c4, %c0_26, %c0_27] : memref<9x32x104xf32, #tpu.memory_space<vmem>>, vector<1x32x104xf32>
    %40 = vector.shape_cast %39 : vector<1x32x104xf32> to vector<32x104xf32>
    %cst_28 = arith.constant dense<0.000000e+00> : vector<32x8xf32>
    %41 = tpu.matmul %40, %13, %cst_28 {dimension_numbers = #tpu.dot_dimension_numbers<[1], [0], [0], [1], [0, 0, 1, 1], [], []>} : vector<32x104xf32>, vector<104x8xf32>, vector<32x8xf32> -> vector<32x8xf32>
    %42 = vector.extract_strided_slice %14 {offsets = [32, 0], sizes = [8, 16], strides = [1, 1]} : vector<72x16xf32> to vector<8x16xf32>
    %cst_29 = arith.constant dense<0.000000e+00> : vector<32x16xf32>
    %43 = tpu.matmul %41, %42, %cst_29 {dimension_numbers = #tpu.dot_dimension_numbers<[1], [0], [0], [1], [0, 0, 1, 1], [], []>} : vector<32x8xf32>, vector<8x16xf32>, vector<32x16xf32> -> vector<32x16xf32>
    %44 = arith.addf %38, %43 : vector<32x16xf32>
    %c5 = arith.constant 5 : index
    %c0_30 = arith.constant 0 : index
    %c0_31 = arith.constant 0 : index
    %45 = vector.load %arg3[%c5, %c0_30, %c0_31] : memref<9x32x104xf32, #tpu.memory_space<vmem>>, vector<1x32x104xf32>
    %46 = vector.shape_cast %45 : vector<1x32x104xf32> to vector<32x104xf32>
    %cst_32 = arith.constant dense<0.000000e+00> : vector<32x8xf32>
    %47 = tpu.matmul %46, %13, %cst_32 {dimension_numbers = #tpu.dot_dimension_numbers<[1], [0], [0], [1], [0, 0, 1, 1], [], []>} : vector<32x104xf32>, vector<104x8xf32>, vector<32x8xf32> -> vector<32x8xf32>
    %48 = vector.extract_strided_slice %14 {offsets = [40, 0], sizes = [8, 16], strides = [1, 1]} : vector<72x16xf32> to vector<8x16xf32>
    %cst_33 = arith.constant dense<0.000000e+00> : vector<32x16xf32>
    %49 = tpu.matmul %47, %48, %cst_33 {dimension_numbers = #tpu.dot_dimension_numbers<[1], [0], [0], [1], [0, 0, 1, 1], [], []>} : vector<32x8xf32>, vector<8x16xf32>, vector<32x16xf32> -> vector<32x16xf32>
    %50 = arith.addf %44, %49 : vector<32x16xf32>
    %c6 = arith.constant 6 : index
    %c0_34 = arith.constant 0 : index
    %c0_35 = arith.constant 0 : index
    %51 = vector.load %arg3[%c6, %c0_34, %c0_35] : memref<9x32x104xf32, #tpu.memory_space<vmem>>, vector<1x32x104xf32>
    %52 = vector.shape_cast %51 : vector<1x32x104xf32> to vector<32x104xf32>
    %cst_36 = arith.constant dense<0.000000e+00> : vector<32x8xf32>
    %53 = tpu.matmul %52, %13, %cst_36 {dimension_numbers = #tpu.dot_dimension_numbers<[1], [0], [0], [1], [0, 0, 1, 1], [], []>} : vector<32x104xf32>, vector<104x8xf32>, vector<32x8xf32> -> vector<32x8xf32>
    %54 = vector.extract_strided_slice %14 {offsets = [48, 0], sizes = [8, 16], strides = [1, 1]} : vector<72x16xf32> to vector<8x16xf32>
    %cst_37 = arith.constant dense<0.000000e+00> : vector<32x16xf32>
    %55 = tpu.matmul %53, %54, %cst_37 {dimension_numbers = #tpu.dot_dimension_numbers<[1], [0], [0], [1], [0, 0, 1, 1], [], []>} : vector<32x8xf32>, vector<8x16xf32>, vector<32x16xf32> -> vector<32x16xf32>
    %56 = arith.addf %50, %55 : vector<32x16xf32>
    %c7 = arith.constant 7 : index
    %c0_38 = arith.constant 0 : index
    %c0_39 = arith.constant 0 : index
    %57 = vector.load %arg3[%c7, %c0_38, %c0_39] : memref<9x32x104xf32, #tpu.memory_space<vmem>>, vector<1x32x104xf32>
    %58 = vector.shape_cast %57 : vector<1x32x104xf32> to vector<32x104xf32>
    %cst_40 = arith.constant dense<0.000000e+00> : vector<32x8xf32>
    %59 = tpu.matmul %58, %13, %cst_40 {dimension_numbers = #tpu.dot_dimension_numbers<[1], [0], [0], [1], [0, 0, 1, 1], [], []>} : vector<32x104xf32>, vector<104x8xf32>, vector<32x8xf32> -> vector<32x8xf32>
    %60 = vector.extract_strided_slice %14 {offsets = [56, 0], sizes = [8, 16], strides = [1, 1]} : vector<72x16xf32> to vector<8x16xf32>
    %cst_41 = arith.constant dense<0.000000e+00> : vector<32x16xf32>
    %61 = tpu.matmul %59, %60, %cst_41 {dimension_numbers = #tpu.dot_dimension_numbers<[1], [0], [0], [1], [0, 0, 1, 1], [], []>} : vector<32x8xf32>, vector<8x16xf32>, vector<32x16xf32> -> vector<32x16xf32>
    %62 = arith.addf %56, %61 : vector<32x16xf32>
    %c8 = arith.constant 8 : index
    %c0_42 = arith.constant 0 : index
    %c0_43 = arith.constant 0 : index
    %63 = vector.load %arg3[%c8, %c0_42, %c0_43] : memref<9x32x104xf32, #tpu.memory_space<vmem>>, vector<1x32x104xf32>
    %64 = vector.shape_cast %63 : vector<1x32x104xf32> to vector<32x104xf32>
    %cst_44 = arith.constant dense<0.000000e+00> : vector<32x8xf32>
    %65 = tpu.matmul %64, %13, %cst_44 {dimension_numbers = #tpu.dot_dimension_numbers<[1], [0], [0], [1], [0, 0, 1, 1], [], []>} : vector<32x104xf32>, vector<104x8xf32>, vector<32x8xf32> -> vector<32x8xf32>
    %66 = vector.extract_strided_slice %14 {offsets = [64, 0], sizes = [8, 16], strides = [1, 1]} : vector<72x16xf32> to vector<8x16xf32>
    %cst_45 = arith.constant dense<0.000000e+00> : vector<32x16xf32>
    %67 = tpu.matmul %65, %66, %cst_45 {dimension_numbers = #tpu.dot_dimension_numbers<[1], [0], [0], [1], [0, 0, 1, 1], [], []>} : vector<32x8xf32>, vector<8x16xf32>, vector<32x16xf32> -> vector<32x16xf32>
    %68 = arith.addf %62, %67 : vector<32x16xf32>
    %69 = vector.extract_strided_slice %68 {offsets = [0, 0], sizes = [8, 16], strides = [1, 1]} : vector<32x16xf32> to vector<8x16xf32>
    %70 = vector.extract_strided_slice %68 {offsets = [8, 0], sizes = [8, 16], strides = [1, 1]} : vector<32x16xf32> to vector<8x16xf32>
    %71 = arith.maximumf %69, %70 : vector<8x16xf32>
    %72 = vector.extract_strided_slice %68 {offsets = [16, 0], sizes = [8, 16], strides = [1, 1]} : vector<32x16xf32> to vector<8x16xf32>
    %73 = vector.extract_strided_slice %68 {offsets = [24, 0], sizes = [8, 16], strides = [1, 1]} : vector<32x16xf32> to vector<8x16xf32>
    %74 = arith.maximumf %72, %73 : vector<8x16xf32>
    %75 = arith.maximumf %71, %74 : vector<8x16xf32>
    %76 = vector.broadcast %15 : vector<1x16xf32> to vector<8x16xf32>
    %77 = arith.addf %75, %76 : vector<8x16xf32>
    %78 = math.tanh %77 : vector<8x16xf32>
    %c0_46 = arith.constant 0 : index
    %c0_47 = arith.constant 0 : index
    %79 = vector.load %arg6[%c0_46, %c0_47] : memref<8x16xf32, #tpu.memory_space<vmem>>, vector<8x16xf32>
    tpu.vector_store %arg6[%c0_46, %c0_47], %78 {strides = array<i32>} : memref<8x16xf32, #tpu.memory_space<vmem>>, vector<8x16xf32>,
    return
  }
}

</mosaic_0001>

<bundles_post_ra>
// kernel: _lambda_.1
= control target key start
LH: loop header
LB: loop body
LE: loop exit
PB: predicated region body
PF: predicated region fallthrough
CT: control target
= control target key end

     0   :  { %vm81_vm0 = vcmask 293888   ;;  %vm238_vm1 = vcmask 1043456   ;;  %vm652_vm2 = vcmask 850944   ;;  %vm852_vm3 = vcmask 64512   ;;  %s4343_s1 = inlined_call_operand.vmem [shape: f32[36,8], index: 1, kind: input, shape index: {}]   ;;  %s4344_s0 = inlined_call_operand.vmem [shape: f32[416,36], index: 0, kind: input, shape index: {}]   ;;  %s4345_s3 = inlined_call_operand.vmem [shape: f32[9,32,104], index: 3, kind: input, shape index: {}]   ;;  %s4346_s2 = inlined_call_operand.vmem [shape: f32[1,8], index: 2, kind: input, shape index: {}]   ;;  %s4347_s4 = inlined_call_operand.vmem [shape: f32[72,16], index: 4, kind: input, shape index: {}]   ;;  %s4348_s5 = inlined_call_operand.vmem [shape: f32[1,16], index: 5, kind: input, shape index: {}]   ;;  %s4349_s6 = inlined_call_operand.vmem [shape: f32[8,16], index: 6, kind: output, shape index: {}]  }
   0x1   :  { %v75_v0 = vld [vmem:[%s4343_s1] sm:$0xff]  ;;  %v76_v1 = vld [vmem:[%s4343_s1 + $0x8] sm:$0xff]  ;;  %v77_v2 = vld [vmem:[%s4343_s1 + $0x10] sm:$0xff]  ;;  %vm2479_vm4 = vcmask 130048  }
   0x2   :  { %v3347_v3 = vpack.c.bf16 %v76_v1, %v75_v0  ;;  %v78_v4 = vld [vmem:[%s4343_s1 + $0x18] sm:$0xff]  ;;  %v23_v5 = vld [vmem:[%s4344_s0] sm:$0xff]  ;;  %v24_v8 = vld [vmem:[%s4344_s0 + $0x8] sm:$0xff] }
   0x3   :  { %v3351_v6 = vpack.c.bf16 %v78_v4, %v77_v2  ;;  %2909 = vmatprep.mubr.msk.f32.mxu0 %vm81_vm0, %v23_v5  ;;  %v79_v7 = vld [vmem:[%s4343_s1 + $0x20] sm:$0xf]  ;;  %v25_v9 = vld [vmem:[%s4344_s0 + $0x10] sm:$0xff]  ;;  %v26_v10 = vld [vmem:[%s4344_s0 + $0x18] sm:$0xff] }
   0x4   :  { %3348 = vmatprep.subr.bf16.mxu0 %v3347_v3  ;;  %v27_v11 = vld [vmem:[%s4344_s0 + $0x20] sm:$0xff]  ;;  %v28_v12 = vld [vmem:[%s4344_s0 + $0x28] sm:$0xff]  ;;  %v29_v13 = vld [vmem:[%s4344_s0 + $0x30] sm:$0xff] }
   0x5   :  { %3350 = vmatpush3.bf16.msra.mxu0 %v3347_v3  ;;  %v30_v14 = vld [vmem:[%s4344_s0 + $0x38] sm:$0xff]  ;;  %v31_v15 = vld [vmem:[%s4344_s0 + $0x40] sm:$0xff]  ;;  %v32_v16 = vld [vmem:[%s4344_s0 + $0x48] sm:$0xff] }
   0x6   :  { %3352 = vmatprep.subr.bf16.mxu0 %v3351_v6  ;;  %v33_v17 = vld [vmem:[%s4344_s0 + $0x50] sm:$0xff]  ;;  %v34_v18 = vld [vmem:[%s4344_s0 + $0x58] sm:$0xff]  ;;  %v35_v19 = vld [vmem:[%s4344_s0 + $0x60] sm:$0xff] }
   0x7   :  { %v36_v20 = vld [vmem:[%s4344_s0 + $0x68] sm:$0xff]  ;;  %v37_v21 = vld [vmem:[%s4344_s0 + $0x70] sm:$0xff]  ;;  %v38_v22 = vld [vmem:[%s4344_s0 + $0x78] sm:$0xff] }
   0x8   :  { %v39_v23 = vld [vmem:[%s4344_s0 + $0x80] sm:$0xff]  ;;  %v40_v24 = vld [vmem:[%s4344_s0 + $0x88] sm:$0xff]  ;;  %v41_v25 = vld [vmem:[%s4344_s0 + $0x90] sm:$0xff] }
   0x9   :  { %3354 = vmatpush3.bf16.msra.mxu0 %v3351_v6  ;;  %v42_v26 = vld [vmem:[%s4344_s0 + $0x98] sm:$0xff]  ;;  %v43_v27 = vld [vmem:[%s4344_s0 + $0xa0] sm:$0xff]  ;;  %v44_v28 = vld [vmem:[%s4344_s0 + $0xa8] sm:$0xff] }
   0xa   :  { %2907 = vmatprep.subr.msk.mxu0 %vm238_vm1, %v79_v7  ;;  %v45_v29 = vld [vmem:[%s4344_s0 + $0xb0] sm:$0xff]  ;;  %v46_v30 = vld [vmem:[%s4344_s0 + $0xb8] sm:$0xff]  ;;  %v47_v31 = vld [vmem:[%s4344_s0 + $0xc0] sm:$0xff] }
   0xb   :  { %v48_v32 = vld [vmem:[%s4344_s0 + $0xc8] sm:$0xff]  ;;  %v49_v33 = vld [vmem:[%s4344_s0 + $0xd0] sm:$0xff]  ;;  %v50_v34 = vld [vmem:[%s4344_s0 + $0xd8] sm:$0xff] }
   0xc   :  { %v51_v35 = vld [vmem:[%s4344_s0 + $0xe0] sm:$0xff]  ;;  %v52_v36 = vld [vmem:[%s4344_s0 + $0xe8] sm:$0xff]  ;;  %v53_v37 = vld [vmem:[%s4344_s0 + $0xf0] sm:$0xff] }
   0xd   :  { %2908 = vmatpush3.msk.msra.mxu0 %vm238_vm1, %v79_v7  ;;  %v54_v38 = vld [vmem:[%s4344_s0 + $0xf8] sm:$0xff]  ;;  %v55_v39 = vld [vmem:[%s4344_s0 + $0x100] sm:$0xff]  ;;  %v56_v40 = vld [vmem:[%s4344_s0 + $0x108] sm:$0xff] }
   0xe   :  { %2910 = vmatmul.mubr.msk.f32.vlgmr.msra.gmra.mrb[0].mxu0 %vm81_vm0, %v24_v8  ;;  %v57_v41 = vld [vmem:[%s4344_s0 + $0x110] sm:$0xff]  ;;  %v58_v42 = vld [vmem:[%s4344_s0 + $0x118] sm:$0xff]  ;;  %v59_v43 = vld [vmem:[%s4344_s0 + $0x120] sm:$0xff] }
   0xf   :  { %2912 = vmatprep.mubr.msk.f32.mxu0 %vm81_vm0, %v25_v9  ;;  %v60_v44 = vld [vmem:[%s4344_s0 + $0x128] sm:$0xff]  ;;  %v61_v45 = vld [vmem:[%s4344_s0 + $0x130] sm:$0xff]  ;;  %v62_v46 = vld [vmem:[%s4344_s0 + $0x138] sm:$0xff] }
  0x10   :  { %v63_v47 = vld [vmem:[%s4344_s0 + $0x140] sm:$0xff]  ;;  %v64_v48 = vld [vmem:[%s4344_s0 + $0x148] sm:$0xff]  ;;  %v65_v49 = vld [vmem:[%s4344_s0 + $0x150] sm:$0xff] }
  0x11   :  { %v66_v50 = vld [vmem:[%s4344_s0 + $0x158] sm:$0xff]  ;;  %v67_v51 = vld [vmem:[%s4344_s0 + $0x160] sm:$0xff]  ;;  %v68_v52 = vld [vmem:[%s4344_s0 + $0x168] sm:$0xff] }
  0x12   :  { %2913 = vmatmul.mubr.msk.f32.gmra.mrb[2].mxu0 %vm81_vm0, %v26_v10  ;;  %v69_v53 = vld [vmem:[%s4344_s0 + $0x170] sm:$0xff]  ;;  %v70_v54 = vld [vmem:[%s4344_s0 + $0x178] sm:$0xff]  ;;  %v71_v55 = vld [vmem:[%s4344_s0 + $0x180] sm:$0xff] }
  0x13   :  { %2915 = vmatprep.mubr.msk.f32.mxu0 %vm81_vm0, %v27_v11  ;;  %v72_v56 = vld [vmem:[%s4344_s0 + $0x188] sm:$0xff]  ;;  %v73_v57 = vld [vmem:[%s4344_s0 + $0x190] sm:$0xff]  ;;  %v74_v58 = vld [vmem:[%s4344_s0 + $0x198] sm:$0xff] }
  0x14   :  { %v648_v59 = vld [vmem:[%s4345_s3] sm:$0xff] }
  0x15   :  { %3013 = vmatprep.mubr.msk.f32.mxu1 %vm652_vm2, %v648_v59  ;;  %v2571_v60 = vld [vmem:[%s4345_s3 + $0x60] sm:$0xff] }
  0x16   :  { %2916 = vmatmul.mubr.msk.f32.gmra.mrb[4].mxu0 %vm81_vm0, %v28_v12 }
  0x17   :  { %2918 = vmatprep.mubr.msk.f32.mxu0 %vm81_vm0, %v29_v13 }
  0x1a   :  { %2919 = vmatmul.mubr.msk.f32.gmra.mrb[6].mxu0 %vm81_vm0, %v30_v14 }
  0x1b   :  { %2921 = vmatprep.mubr.msk.f32.mxu0 %vm81_vm0, %v31_v15 }
  0x1e   :  { %2922 = vmatmul.mubr.msk.f32.gmra.mrb[8].mxu0 %vm81_vm0, %v32_v16 }
  0x1f   :  { %2924 = vmatprep.mubr.msk.f32.mxu0 %vm81_vm0, %v33_v17 }
  0x22   :  { %2925 = vmatmul.mubr.msk.f32.gmra.mrb[10].mxu0 %vm81_vm0, %v34_v18 }
  0x23   :  { %2927 = vmatprep.mubr.msk.f32.mxu0 %vm81_vm0, %v35_v19 }
  0x26   :  { %2928 = vmatmul.mubr.msk.f32.gmra.mrb[12].mxu0 %vm81_vm0, %v36_v20 }
  0x27   :  { %2930 = vmatprep.mubr.msk.f32.mxu0 %vm81_vm0, %v37_v21 }
  0x2a   :  { %2931 = vmatmul.mubr.msk.f32.gmra.mrb[14].mxu0 %vm81_vm0, %v38_v22 }
  0x2b   :  { %2933 = vmatprep.mubr.msk.f32.mxu0 %vm81_vm0, %v39_v23 }
  0x2e   :  { %2934 = vmatmul.mubr.msk.f32.gmra.mrb[16].mxu0 %vm81_vm0, %v40_v24 }
  0x2f   :  { %2936 = vmatprep.mubr.msk.f32.mxu0 %vm81_vm0, %v41_v25 }
  0x32   :  { %2937 = vmatmul.mubr.msk.f32.gmra.mrb[18].mxu0 %vm81_vm0, %v42_v26 }
  0x33   :  { %2939 = vmatprep.mubr.msk.f32.mxu0 %vm81_vm0, %v43_v27 }
  0x36   :  { %2940 = vmatmul.mubr.msk.f32.gmra.mrb[20].mxu0 %vm81_vm0, %v44_v28 }
  0x37   :  { %2942 = vmatprep.mubr.msk.f32.mxu0 %vm81_vm0, %v45_v29 }
  0x3a   :  { %2943 = vmatmul.mubr.msk.f32.gmra.mrb[22].mxu0 %vm81_vm0, %v46_v30 }
  0x3b   :  { %2945 = vmatprep.mubr.msk.f32.mxu0 %vm81_vm0, %v47_v31 }
  0x3e   :  { %2946 = vmatmul.mubr.msk.f32.gmra.mrb[24].mxu0 %vm81_vm0, %v48_v32 }
  0x3f   :  { %2948 = vmatprep.mubr.msk.f32.mxu0 %vm81_vm0, %v49_v33 }
  0x42   :  { %2949 = vmatmul.mubr.msk.f32.gmra.mrb[26].mxu0 %vm81_vm0, %v50_v34 }
  0x43   :  { %2951 = vmatprep.mubr.msk.f32.mxu0 %vm81_vm0, %v51_v35 }
  0x46   :  { %2952 = vmatmul.mubr.msk.f32.gmra.mrb[28].mxu0 %vm81_vm0, %v52_v36 }
  0x47   :  { %2954 = vmatprep.mubr.msk.f32.mxu0 %vm81_vm0, %v53_v37 }
  0x4a   :  { %2955 = vmatmul.mubr.msk.f32.gmra.mrb[30].mxu0 %vm81_vm0, %v54_v38 }
  0x4b   :  { %2957 = vmatprep.mubr.msk.f32.mxu0 %vm81_vm0, %v55_v39 }
  0x4e   :  { %2958 = vmatmul.mubr.msk.f32.gmra.mrb[32].mxu0 %vm81_vm0, %v56_v40 }
  0x4f   :  { %2960 = vmatprep.mubr.msk.f32.mxu0 %vm81_vm0, %v57_v41 }
  0x52   :  { %2961 = vmatmul.mubr.msk.f32.gmra.mrb[34].mxu0 %vm81_vm0, %v58_v42 }
  0x53   :  { %2963 = vmatprep.mubr.msk.f32.mxu0 %vm81_vm0, %v59_v43 }
  0x56   :  { %2964 = vmatmul.mubr.msk.f32.gmra.mrb[36].mxu0 %vm81_vm0, %v60_v44 }
  0x57   :  { %2966 = vmatprep.mubr.msk.f32.mxu0 %vm81_vm0, %v61_v45 }
  0x5a   :  { %2967 = vmatmul.mubr.msk.f32.gmra.mrb[38].mxu0 %vm81_vm0, %v62_v46 }
  0x5b   :  { %2969 = vmatprep.mubr.msk.f32.mxu0 %vm81_vm0, %v63_v47 }
  0x5e   :  { %2970 = vmatmul.mubr.msk.f32.gmra.mrb[40].mxu0 %vm81_vm0, %v64_v48 }
  0x5f   :  { %2972 = vmatprep.mubr.msk.f32.mxu0 %vm81_vm0, %v65_v49 }
  0x62   :  { %2973 = vmatmul.mubr.msk.f32.gmra.mrb[42].mxu0 %vm81_vm0, %v66_v50 }
  0x63   :  { %2975 = vmatprep.mubr.msk.f32.mxu0 %vm81_vm0, %v67_v51 }
  0x66   :  { %2976 = vmatmul.mubr.msk.f32.gmra.mrb[44].mxu0 %vm81_vm0, %v68_v52  ;;  %v3957_v52 = vld [vmem:[%s4346_s2] ss:$0 sm:$0xff] }
  0x67   :  { %2978 = vmatprep.mubr.msk.f32.mxu0 %vm81_vm0, %v69_v53 }
  0x6a   :  { %2979 = vmatmul.mubr.msk.f32.gmra.mrb[46].mxu0 %vm81_vm0, %v70_v54 }
  0x6b   :  { %2981 = vmatprep.mubr.msk.f32.mxu0 %vm81_vm0, %v71_v55 }
  0x6e   :  { %2982 = vmatmul.mubr.msk.f32.gmra.mrb[48].mxu0 %vm81_vm0, %v72_v56 }
  0x6f   :  { %2984 = vmatprep.mubr.msk.f32.mxu0 %vm81_vm0, %v73_v57 }
  0x72   :  { %2985 = vmatmul.mubr.msk.f32.gmra.mrb[50].mxu0 %vm81_vm0, %v74_v58 }
  0x73   :  { %3133 = vmatprep.mubr.msk.f32.mxu0 %vm652_vm2, %v2571_v60 }
  0xe1   :  { %v3899_v61 = vpop.f32.mrb[0].mxu0 }
  0xe2   :  { %v308_v62 = vpop.f32.mrb[1].mxu0 }
  0xe5   :  { %v3901_v63 = vpop.f32.mrb[2].mxu0 }
  0xe6   :  { %v318_v0 = vpop.f32.mrb[3].mxu0 }
  0xe9   :  { %v3903_v1 = vpop.f32.mrb[4].mxu0 }
  0xea   :  { %v3905_v2 = vpop.f32.mrb[5].mxu0 }
  0xed   :  { %v3907_v3 = vpop.f32.mrb[6].mxu0 }
  0xee   :  { %v3909_v4 = vpop.f32.mrb[7].mxu0 }
  0xf1   :  { %v3911_v5 = vpop.f32.mrb[8].mxu0 }
  0xf2   :  { %v3913_v6 = vpop.f32.mrb[9].mxu0 }
  0xf5   :  { %v3915_v7 = vpop.f32.mrb[10].mxu0 }
  0xf6   :  { %v3917_v8 = vpop.f32.mrb[11].mxu0 }
  0xf9   :  { %v2929_v9 = vpop.f32.mrb[12].mxu0 }
  0xfa   :  { %v567_v10 = vmax.f32 %v308_v62, %v2929_v9  ;;  %v3919_v11 = vpop.f32.mrb[13].mxu0 }
  0xfd   :  { %v2932_v12 = vpop.f32.mrb[14].mxu0 }
  0xfe   :  { %v569_v13 = vmax.f32 %v318_v0, %v2932_v12  ;;  %v378_v14 = vpop.f32.mrb[15].mxu0 }
  0xff   :  { %v568_v15 = vmax.f32 %v3899_v61, %v378_v14 }
 0x101   :  { %v2935_v16 = vpop.f32.mrb[16].mxu0 }
 0x102   :  { %v571_v17 = vmax.f32 %v3905_v2, %v2935_v16  ;;  %v388_v18 = vpop.f32.mrb[17].mxu0 }
 0x103   :  { %v570_v19 = vmax.f32 %v3901_v63, %v388_v18 }
 0x105   :  { %v2938_v20 = vpop.f32.mrb[18].mxu0 }
 0x106   :  { %v573_v21 = vmax.f32 %v3909_v4, %v2938_v20  ;;  %v398_v22 = vpop.f32.mrb[19].mxu0 }
 0x107   :  { %v572_v23 = vmax.f32 %v3903_v1, %v398_v22 }
 0x109   :  { %v3926_v24 = vpop.f32.mrb[20].mxu0 }
 0x10a   :  { %v575_v25 = vmax.f32 %v3913_v6, %v3926_v24  ;;  %v3930_v26 = vpop.f32.mrb[21].mxu0 }
 0x10b   :  { %v574_v27 = vmax.f32 %v3907_v3, %v3930_v26 }
 0x10d   :  { %v3934_v28 = vpop.f32.mrb[22].mxu0 }
 0x10e   :  { %v577_v29 = vmax.f32 %v3917_v8, %v3934_v28  ;;  %v3938_v30 = vpop.f32.mrb[23].mxu0 }
 0x10f   :  { %v576_v31 = vmax.f32 %v3911_v5, %v3938_v30 }
 0x111   :  { %v3942_v32 = vpop.f32.mrb[24].mxu0 }
 0x112   :  { %v579_v33 = vmax.f32 %v3919_v11, %v3942_v32  ;;  %v3946_v34 = vpop.f32.mrb[25].mxu0 }
 0x113   :  { %v578_v35 = vmax.f32 %v3915_v7, %v3946_v34 }
 0x115   :  { %v2950_v36 = vpop.f32.mrb[26].mxu0 }
 0x116   :  { %v438_v37 = vpop.f32.mrb[27].mxu0 }
 0x119   :  { %v2953_v38 = vpop.f32.mrb[28].mxu0 }
 0x11a   :  { %v448_v39 = vpop.f32.mrb[29].mxu0 }
 0x11d   :  { %v2956_v40 = vpop.f32.mrb[30].mxu0 }
 0x11e   :  { %v458_v41 = vpop.f32.mrb[31].mxu0 }
 0x121   :  { %v2959_v42 = vpop.f32.mrb[32].mxu0 }
 0x122   :  { %v468_v43 = vpop.f32.mrb[33].mxu0 }
 0x125   :  { %v2962_v44 = vpop.f32.mrb[34].mxu0 }
 0x126   :  { %v478_v45 = vpop.f32.mrb[35].mxu0 }
 0x129   :  { %v3950_v46 = vpop.f32.mrb[36].mxu0 }
 0x12a   :  { %v488_v47 = vpop.f32.mrb[37].mxu0 }
 0x12d   :  { %v2968_v48 = vpop.f32.mrb[38].mxu0 }
 0x12e   :  { %v580_v49 = vmax.f32 %v438_v37, %v2968_v48  ;;  %v3952_v50 = vpop.f32.mrb[39].mxu0 }
 0x130   :  { %v593_v51 = vmax.f32 %v567_v10, %v580_v49 }
 0x131   :  { %v2971_v53 = vpop.f32.mrb[40].mxu0 }
 0x132   :  { %v582_v54 = vmax.f32 %v448_v39, %v2971_v53  ;;  %v508_v55 = vpop.f32.mrb[41].mxu0  ;;  %v612_v57 = vadd.f32 %v3957_v52, %v593_v51 }
 0x133   :  { %v581_v56 = vmax.f32 %v2950_v36, %v508_v55 }
 0x134   :  { %v595_v58 = vmax.f32 %v569_v13, %v582_v54  ;;  %3605 = vtanh.f32 %v612_v57  ;;  %v649_v57 = vld [vmem:[%s4345_s3 + $0x8] sm:$0xff] }
 0x135   :  { %v594_v59 = vmax.f32 %v568_v15, %v581_v56  ;;  %v2974_v60 = vpop.f32.mrb[42].mxu0 }
 0x136   :  { %v584_v61 = vmax.f32 %v458_v41, %v2974_v60  ;;  %v518_v62 = vpop.f32.mrb[43].mxu0  ;;  %v614_v1 = vadd.f32 %v3957_v52, %v595_v58  ;;  %v2572_v58 = vld [vmem:[%s4345_s3 + $0x68] sm:$0xff]  ;;  %v651_v60 = vld [vmem:[%s4345_s3 + $0x18] sm:$0xff] }
 0x137   :  { %v613_v63 = vadd.f32 %v3957_v52, %v594_v59  ;;  %v583_v0 = vmax.f32 %v2953_v38, %v518_v62  ;;  %v650_v59 = vld [vmem:[%s4345_s3 + $0x10] sm:$0xff]  ;;  %v2574_v62 = vld [vmem:[%s4345_s3 + $0x78] sm:$0xff] }
 0x138   :  { %v597_v2 = vmax.f32 %v571_v17, %v584_v61  ;;  %v2573_v61 = vld [vmem:[%s4345_s3 + $0x70] sm:$0xff] }
 0x139   :  { %3607 = vtanh.f32 %v613_v63  ;;  %v596_v4 = vmax.f32 %v570_v19, %v583_v0  ;;  %v2977_v9 = vpop.f32.mrb[44].mxu0  ;;  %v2543_v63 = vld [vmem:[%s4345_s3 + $0x20] sm:$0xff] }
 0x13a   :  { %v586_v10 = vmax.f32 %v468_v43, %v2977_v9  ;;  %v528_v12 = vpop.f32.mrb[45].mxu0  ;;  %3609 = vtanh.f32 %v614_v1  ;;  %v616_v13 = vadd.f32 %v3957_v52, %v597_v2  ;;  %v2595_v0 = vld [vmem:[%s4345_s3 + $0xa0] sm:$0xff]  ;;  %v2544_v1 = vld [vmem:[%s4345_s3 + $0x28] sm:$0xff]  ;;  %v2545_v2 = vld [vmem:[%s4345_s3 + $0x30] sm:$0xff] }
 0x13b   :  { %v615_v14 = vadd.f32 %v3957_v52, %v596_v4  ;;  %v585_v16 = vmax.f32 %v2956_v40, %v528_v12  ;;  %v2596_v4 = vld [vmem:[%s4345_s3 + $0xa8] sm:$0xff]  ;;  %v2597_v9 = vld [vmem:[%s4345_s3 + $0xb0] sm:$0xff]  ;;  %v2598_v12 = vld [vmem:[%s4345_s3 + $0xb8] sm:$0xff] }
 0x13c   :  { %v599_v15 = vmax.f32 %v573_v21, %v586_v10  ;;  %v2546_v10 = vld [vmem:[%s4345_s3 + $0x38] sm:$0xff] }
 0x13d   :  { %3611 = vtanh.f32 %v615_v14  ;;  %v598_v18 = vmax.f32 %v572_v23, %v585_v16  ;;  %v2980_v20 = vpop.f32.mrb[46].mxu0  ;;  %v2607_v14 = vld [vmem:[%s4345_s3 + $0xc0] sm:$0xff]  ;;  %v2608_v16 = vld [vmem:[%s4345_s3 + $0xc8] sm:$0xff] }
 0x13e   :  { %v588_v22 = vmax.f32 %v478_v45, %v2980_v20  ;;  %v538_v36 = vpop.f32.mrb[47].mxu0  ;;  %3613 = vtanh.f32 %v616_v13  ;;  %v618_v19 = vadd.f32 %v3957_v52, %v599_v15  ;;  %v3606_v23 = vpop.eup %3605  ;;  %v639_v13 = vld [vmem:[%s4347_s4 + $0x8] sm:$0xff]  ;;  %v638_v15 = vld [vmem:[%s4347_s4] sm:$0xff] }
 0x13f   :  { %v617_v37 = vadd.f32 %v3957_v52, %v598_v18  ;;  %v587_v17 = vmax.f32 %v2959_v42, %v538_v36 }
 0x140   :  { %v601_v38 = vmax.f32 %v575_v25, %v588_v22 }
 0x141   :  { %3615 = vtanh.f32 %v617_v37  ;;  %v600_v21 = vmax.f32 %v574_v27, %v587_v17  ;;  %v2983_v39 = vpop.f32.mrb[48].mxu0 }
 0x142   :  { %v590_v40 = vmax.f32 %v488_v47, %v2983_v39  ;;  %v548_v41 = vpop.f32.mrb[49].mxu0  ;;  %3617 = vtanh.f32 %v618_v19  ;;  %v620_v49 = vadd.f32 %v3957_v52, %v601_v38  ;;  %v2560_v39 = vld [vmem:[%s4345_s3 + $0x48] sm:$0xff] }
 0x143   :  { %v3608_v43 = vpop.eup %3607  ;;  %v619_v45 = vadd.f32 %v3957_v52, %v600_v21  ;;  %v589_v42 = vmax.f32 %v2962_v44, %v548_v41  ;;  %v2559_v21 = vld [vmem:[%s4345_s3 + $0x40] sm:$0xff]  ;;  %v2562_v41 = vld [vmem:[%s4345_s3 + $0x58] sm:$0xff] }
 0x144   :  { %v3973_v48 = vpack.c.bf16 %v3608_v43, %v3606_v23  ;;  %v603_v6 = vmax.f32 %v577_v29, %v590_v40  ;;  %v3610_v25 = vpop.eup %3609  ;;  %v640_v23 = vld [vmem:[%s4347_s4 + $0x10] sm:$0xff]  ;;  %v641_v43 = vld [vmem:[%s4347_s4 + $0x18] sm:$0xff] }
 0x145   :  { %3619 = vtanh.f32 %v619_v45  ;;  %v602_v3 = vmax.f32 %v576_v31, %v589_v42  ;;  %v2986_v24 = vpop.f32.mrb[50].mxu0  ;;  %v2561_v40 = vld [vmem:[%s4345_s3 + $0x50] sm:$0xff] }
 0x146   :  { %v592_v26 = vmax.f32 %v3952_v50, %v2986_v24  ;;  %v558_v27 = vpop.f32.mrb[51].mxu0  ;;  %3356 = vmatprep.subr.bf16.mxu1 %v3973_v48  ;;  %3428 = vmatprep.subr.bf16.mxu0 %v3973_v48  ;;  %3621 = vtanh.f32 %v620_v49  ;;  %v622_v28 = vadd.f32 %v3957_v52, %v603_v6  ;;  %v2610_v24 = vld [vmem:[%s4345_s3 + $0xd8] sm:$0xff] }
 0x147   :  { %v3612_v44 = vpop.eup %3611  ;;  %v621_v47 = vadd.f32 %v3957_v52, %v602_v3  ;;  %v591_v8 = vmax.f32 %v3950_v46, %v558_v27  ;;  %3358 = vmatpush3.bf16.msra.mxu1 %v3973_v48  ;;  %3430 = vmatpush3.bf16.msra.mxu0 %v3973_v48  ;;  %v2609_v3 = vld [vmem:[%s4345_s3 + $0xd0] sm:$0xff] }
 0x148   :  { %v3989_v5 = vpack.c.bf16 %v3612_v44, %v3610_v25  ;;  %v605_v29 = vmax.f32 %v579_v33, %v592_v26  ;;  %v3614_v31 = vpop.eup %3613 }
 0x149   :  { %3623 = vtanh.f32 %v621_v47  ;;  %v604_v30 = vmax.f32 %v578_v35, %v591_v8 }
 0x14a   :  { %3360 = vmatprep.subr.bf16.mxu1 %v3989_v5  ;;  %3432 = vmatprep.subr.bf16.mxu0 %v3989_v5  ;;  %3625 = vtanh.f32 %v622_v28  ;;  %v624_v11 = vadd.f32 %v3957_v52, %v605_v29  ;;  %v2583_v28 = vld [vmem:[%s4345_s3 + $0x80] sm:$0xff]  ;;  %v2584_v29 = vld [vmem:[%s4345_s3 + $0x88] sm:$0xff] }
 0x14b   :  { %v3616_v46 = vpop.eup %3615  ;;  %v623_v50 = vadd.f32 %v3957_v52, %v604_v30  ;;  %3362 = vmatpush3.bf16.msra.mxu1 %v3989_v5  ;;  %3434 = vmatpush3.bf16.msra.mxu0 %v3989_v5  ;;  %v642_v30 = vld [vmem:[%s4347_s4 + $0x20] sm:$0xff] }
 0x14c   :  { %v4003_v51 = vpack.c.bf16 %v3616_v46, %v3614_v31  ;;  %v3618_v7 = vpop.eup %3617  ;;  %v2585_v31 = vld [vmem:[%s4345_s3 + $0x90] sm:$0xff]  ;;  %v2586_v46 = vld [vmem:[%s4345_s3 + $0x98] sm:$0xff] }
 0x14d   :  { %3627 = vtanh.f32 %v623_v50  ;;  %v643_v50 = vld [vmem:[%s4347_s4 + $0x28] sm:$0xff] }
 0x14e   :  { %3364 = vmatprep.subr.bf16.mxu1 %v4003_v51  ;;  %3436 = vmatprep.subr.bf16.mxu0 %v4003_v51  ;;  %3629 = vtanh.f32 %v624_v11 }
 0x14f   :  { %v3620_v32 = vpop.eup %3619  ;;  %3366 = vmatpush3.bf16.msra.mxu1 %v4003_v51  ;;  %3438 = vmatpush3.bf16.msra.mxu0 %v4003_v51 }
 0x150   :  { %v4010_v33 = vpack.c.bf16 %v3620_v32, %v3618_v7  ;;  %v3622_v34 = vpop.eup %3621 }
 0x152   :  { %3368 = vmatprep.subr.bf16.mxu1 %v4010_v33  ;;  %3440 = vmatprep.subr.bf16.mxu0 %v4010_v33 }
 0x153   :  { %v3624_v35 = vpop.eup %3623  ;;  %3370 = vmatpush3.bf16.msra.mxu1 %v4010_v33  ;;  %3442 = vmatpush3.bf16.msra.mxu0 %v4010_v33 }
 0x154   :  { %v4016_v52 = vpack.c.bf16 %v3624_v35, %v3622_v34  ;;  %v3626_v53 = vpop.eup %3625 }
 0x156   :  { %3372 = vmatprep.subr.bf16.mxu1 %v4016_v52  ;;  %3444 = vmatprep.subr.bf16.mxu0 %v4016_v52 }
 0x157   :  { %v3628_v54 = vpop.eup %3627  ;;  %3374 = vmatpush3.bf16.msra.mxu1 %v4016_v52  ;;  %3446 = vmatpush3.bf16.msra.mxu0 %v4016_v52 }
 0x158   :  { %v4022_v55 = vpack.c.bf16 %v3628_v54, %v3626_v53  ;;  %v4026_v56 = vpop.eup %3629  ;;  %v2631_v54 = vld [vmem:[%s4345_s3 + $0x100] sm:$0xff] }
 0x15a   :  { %3376 = vmatprep.subr.bf16.mxu1 %v4022_v55  ;;  %3448 = vmatprep.subr.bf16.mxu0 %v4022_v55 }
 0x15b   :  { %3378 = vmatpush3.bf16.msra.mxu1 %v4022_v55  ;;  %3450 = vmatpush3.bf16.msra.mxu0 %v4022_v55 }
 0x15c   :  { %3011 = vmatprep.subr.mxu1 %v4026_v56  ;;  %3131 = vmatprep.subr.mxu0 %v4026_v56 }
 0x15f   :  { %3012 = vmatpush3.msra.mxu1 %v4026_v56  ;;  %3132 = vmatpush3.msra.mxu0 %v4026_v56 }
 0x160   :  { %3014 = vmatmul.mubr.msk.f32.vlgmr.msra.gmra.mrb[0].mxu1 %vm652_vm2, %v649_v57  ;;  %3380 = vmatprep.subr.bf16.mxu1 %v3973_v48  ;;  %v2632_v57 = vld [vmem:[%s4345_s3 + $0x108] sm:$0xff] }
 0x161   :  { %3476 = vmatprep.subr.bf16.mxu0 %v3973_v48  ;;  %3382 = vmatpush3.bf16.msra.mxu1 %v3973_v48 }
 0x162   :  { %3134 = vmatmul.mubr.msk.f32.vlgmr.msra.gmra.mrb[52].mxu0 %vm652_vm2, %v2572_v58  ;;  %3384 = vmatprep.subr.bf16.mxu1 %v3989_v5  ;;  %v2633_v58 = vld [vmem:[%s4345_s3 + $0x110] sm:$0xff] }
 0x163   :  { %3478 = vmatpush3.bf16.msra.mxu0 %v3973_v48  ;;  %3016 = vmatprep.mubr.msk.f32.mxu1 %vm652_vm2, %v650_v59  ;;  %v2634_v59 = vld [vmem:[%s4345_s3 + $0x118] sm:$0xff] }
 0x164   :  { %3480 = vmatprep.subr.bf16.mxu0 %v3989_v5  ;;  %3017 = vmatmul.mubr.msk.f32.gmra.mrb[2].mxu1 %vm652_vm2, %v651_v60 }
 0x165   :  { %3386 = vmatpush3.bf16.msra.mxu1 %v3989_v5  ;;  %3136 = vmatprep.mubr.msk.f32.mxu0 %vm652_vm2, %v2573_v61 }
 0x166   :  { %3388 = vmatprep.subr.bf16.mxu1 %v4003_v51  ;;  %3137 = vmatmul.mubr.msk.f32.gmra.mrb[54].mxu0 %vm652_vm2, %v2574_v62  ;;  %v644_v62 = vld [vmem:[%s4347_s4 + $0x30] sm:$0xff] }
 0x167   :  { %3482 = vmatpush3.bf16.msra.mxu0 %v3989_v5  ;;  %3045 = vmatprep.mubr.msk.f32.mxu1 %vm652_vm2, %v2543_v63 }
 0x168   :  { %3484 = vmatprep.subr.bf16.mxu0 %v4003_v51  ;;  %3213 = vmatprep.mubr.msk.f32.mxu0 %vm652_vm2, %v2595_v0 }
 0x169   :  { %3390 = vmatpush3.bf16.msra.mxu1 %v4003_v51 }
 0x16a   :  { %3392 = vmatprep.subr.bf16.mxu1 %v4010_v33 }
 0x16b   :  { %3486 = vmatpush3.bf16.msra.mxu0 %v4003_v51 }
 0x16c   :  { %3488 = vmatprep.subr.bf16.mxu0 %v4010_v33 }
 0x16d   :  { %3394 = vmatpush3.bf16.msra.mxu1 %v4010_v33 }
 0x16e   :  { %3396 = vmatprep.subr.bf16.mxu1 %v4016_v52 }
 0x16f   :  { %3490 = vmatpush3.bf16.msra.mxu0 %v4010_v33 }
 0x170   :  { %3492 = vmatprep.subr.bf16.mxu0 %v4016_v52 }
 0x171   :  { %3398 = vmatpush3.bf16.msra.mxu1 %v4016_v52 }
 0x172   :  { %3400 = vmatprep.subr.bf16.mxu1 %v4022_v55 }
 0x173   :  { %3494 = vmatpush3.bf16.msra.mxu0 %v4016_v52 }
 0x174   :  { %3496 = vmatprep.subr.bf16.mxu0 %v4022_v55 }
 0x175   :  { %3402 = vmatpush3.bf16.msra.mxu1 %v4022_v55 }
 0x176   :  { %3043 = vmatprep.subr.mxu1 %v4026_v56 }
 0x177   :  { %3498 = vmatpush3.bf16.msra.mxu0 %v4022_v55 }
 0x178   :  { %3211 = vmatprep.subr.mxu0 %v4026_v56 }
 0x179   :  { %3044 = vmatpush3.msra.mxu1 %v4026_v56 }
 0x17a   :  { %3046 = vmatmul.mubr.msk.f32.vlgmr.msra.gmra.mrb[4].mxu1 %vm652_vm2, %v2544_v1  ;;  %3051 = vmatprep.subr.mxu1 %v639_v13  ;;  %v2619_v1 = vld [vmem:[%s4345_s3 + $0xe0] sm:$0xff] }
 0x17b   :  { %3212 = vmatpush3.msra.mxu0 %v4026_v56  ;;  %3048 = vmatprep.mubr.msk.f32.mxu1 %vm652_vm2, %v2545_v2 }
 0x17c   :  { %3500 = vmatprep.subr.bf16.mxu0 %v3973_v48  ;;  %3214 = vmatmul.mubr.msk.f32.vlgmr.msra.gmra.mrb[56].mxu0 %vm652_vm2, %v2596_v4 }
 0x17d   :  { %3502 = vmatpush3.bf16.msra.mxu0 %v3973_v48  ;;  %3216 = vmatprep.mubr.msk.f32.mxu0 %vm652_vm2, %v2597_v9 }
 0x17e   :  { %3504 = vmatprep.subr.bf16.mxu0 %v3989_v5  ;;  %3049 = vmatmul.mubr.msk.f32.gmra.mrb[6].mxu1 %vm652_vm2, %v2546_v10 }
 0x17f   :  { %3052 = vmatpush3.msra.mxu1 %v639_v13 }
 0x180   :  { %3217 = vmatmul.mubr.msk.f32.gmra.mrb[58].mxu0 %vm652_vm2, %v2598_v12  ;;  %3059 = vmatprep.subr.mxu1 %v638_v15 }
 0x181   :  { %3506 = vmatpush3.bf16.msra.mxu0 %v3989_v5  ;;  %3253 = vmatprep.mubr.msk.f32.mxu0 %vm652_vm2, %v2607_v14 }
 0x182   :  { %3508 = vmatprep.subr.bf16.mxu0 %v4003_v51 }
 0x185   :  { %3510 = vmatpush3.bf16.msra.mxu0 %v4003_v51 }
 0x186   :  { %3512 = vmatprep.subr.bf16.mxu0 %v4010_v33 }
 0x189   :  { %3514 = vmatpush3.bf16.msra.mxu0 %v4010_v33 }
 0x18a   :  { %3516 = vmatprep.subr.bf16.mxu0 %v4016_v52 }
 0x18d   :  { %3518 = vmatpush3.bf16.msra.mxu0 %v4016_v52 }
 0x18e   :  { %3520 = vmatprep.subr.bf16.mxu0 %v4022_v55 }
 0x191   :  { %3522 = vmatpush3.bf16.msra.mxu0 %v4022_v55 }
 0x192   :  { %3251 = vmatprep.subr.mxu0 %v4026_v56 }
 0x195   :  { %3252 = vmatpush3.msra.mxu0 %v4026_v56 }
 0x196   :  { %3548 = vmatprep.subr.bf16.mxu0 %v3973_v48  ;;  %3254 = vmatmul.mubr.msk.f32.vlgmr.msra.gmra.mrb[60].mxu0 %vm652_vm2, %v2608_v16 }
 0x197   :  { %3550 = vmatpush3.bf16.msra.mxu0 %v3973_v48  ;;  %3256 = vmatprep.mubr.msk.f32.mxu0 %vm652_vm2, %v2609_v3 }
 0x198   :  { %3552 = vmatprep.subr.bf16.mxu0 %v3989_v5 }
 0x19a   :  { %3257 = vmatmul.mubr.msk.f32.gmra.mrb[62].mxu0 %vm652_vm2, %v2610_v24 }
 0x19b   :  { %3554 = vmatpush3.bf16.msra.mxu0 %v3989_v5  ;;  %3333 = vmatprep.mubr.msk.f32.mxu0 %vm652_vm2, %v2631_v54 }
 0x19c   :  { %3556 = vmatprep.subr.bf16.mxu0 %v4003_v51 }
 0x19f   :  { %3558 = vmatpush3.bf16.msra.mxu0 %v4003_v51 }
 0x1a0   :  { %3560 = vmatprep.subr.bf16.mxu0 %v4010_v33 }
 0x1a3   :  { %3562 = vmatpush3.bf16.msra.mxu0 %v4010_v33 }
 0x1a4   :  { %3564 = vmatprep.subr.bf16.mxu0 %v4016_v52 }
 0x1a7   :  { %3566 = vmatpush3.bf16.msra.mxu0 %v4016_v52 }
 0x1a8   :  { %3568 = vmatprep.subr.bf16.mxu0 %v4022_v55 }
 0x1ab   :  { %3570 = vmatpush3.bf16.msra.mxu0 %v4022_v55 }
 0x1ac   :  { %3331 = vmatprep.subr.mxu0 %v4026_v56 }
 0x1af   :  { %3332 = vmatpush3.msra.mxu0 %v4026_v56 }
 0x1b0   :  { %3334 = vmatmul.mubr.msk.f32.vlgmr.msra.gmra.mrb[64].mxu0 %vm652_vm2, %v2632_v57 }
 0x1b1   :  { %3336 = vmatprep.mubr.msk.f32.mxu0 %vm652_vm2, %v2633_v58 }
 0x1b4   :  { %3337 = vmatmul.mubr.msk.f32.gmra.mrb[66].mxu0 %vm652_vm2, %v2634_v59 }
 0x233   :  { %v3015_v18 = vpop.f32.mrb[0].mxu1 }
 0x234   :  { %v731_v20 = vpop.f32.mrb[1].mxu1 }
 0x235   :  { %v3135_v45 = vpop.f32.mrb[52].mxu0 }
 0x236   :  { %v1333_v42 = vpop.f32.mrb[53].mxu0 }
 0x237   :  { %v3018_v22 = vpop.f32.mrb[2].mxu1 }
 0x238   :  { %v741_v36 = vpop.f32.mrb[3].mxu1 }
 0x239   :  { %v3138_v49 = vpop.f32.mrb[54].mxu0 }
 0x23a   :  { %v1343_v6 = vpop.f32.mrb[55].mxu0 }
 0x24d   :  { %v3047_v37 = vpop.f32.mrb[4].mxu1 }
 0x24e   :  { %v833_v17 = vpop.f32.mrb[5].mxu1 }
 0x24f   :  { %3053 = vmatprep.mubr.msk.f32.mxu1 %vm852_vm3, %v833_v17  ;;  %v4210_v25 = vpop.f32.mrb[56].mxu0 }
 0x250   :  { %3054 = vmatmul.mubr.msk.f32.vlgmr.msra.gmra.mrb[8].mxu1 %vm852_vm3, %v3047_v37  ;;  %v4213_v26 = vpop.f32.mrb[57].mxu0 }
 0x251   :  { %3060 = vmatpush3.msra.mxu1 %v638_v15  ;;  %v3050_v19 = vpop.f32.mrb[6].mxu1 }
 0x252   :  { %3404 = vmatprep.subr.bf16.mxu1 %v3973_v48  ;;  %v843_v38 = vpop.f32.mrb[7].mxu1 }
 0x253   :  { %3056 = vmatprep.mubr.msk.f32.mxu1 %vm852_vm3, %v843_v38  ;;  %v3218_v11 = vpop.f32.mrb[58].mxu0  ;;  %v2643_v38 = vld [vmem:[%s4348_s5] ss:$0 sm:$0xff] }
 0x254   :  { %3057 = vmatmul.mubr.msk.f32.gmra.mrb[10].mxu1 %vm852_vm3, %v3050_v19  ;;  %v1749_v7 = vpop.f32.mrb[59].mxu0 }
 0x255   :  { %3061 = vmatprep.mubr.msk.f32.mxu1 %vm852_vm3, %v731_v20 }
 0x258   :  { %3062 = vmatmul.mubr.msk.f32.vlgmr.msra.gmra.mrb[8].mxu1 %vm852_vm3, %v3015_v18 }
 0x259   :  { %3406 = vmatpush3.bf16.msra.mxu1 %v3973_v48  ;;  %3064 = vmatprep.mubr.msk.f32.mxu1 %vm852_vm3, %v741_v36 }
 0x25a   :  { %3408 = vmatprep.subr.bf16.mxu1 %v3989_v5 }
 0x25c   :  { %3065 = vmatmul.mubr.msk.f32.gmra.mrb[10].mxu1 %vm852_vm3, %v3018_v22 }
 0x25d   :  { %3410 = vmatpush3.bf16.msra.mxu1 %v3989_v5  ;;  %3093 = vmatprep.mubr.msk.f32.mxu1 %vm652_vm2, %v2559_v21 }
 0x25e   :  { %3412 = vmatprep.subr.bf16.mxu1 %v4003_v51 }
 0x261   :  { %3414 = vmatpush3.bf16.msra.mxu1 %v4003_v51 }
 0x262   :  { %3416 = vmatprep.subr.bf16.mxu1 %v4010_v33 }
 0x265   :  { %3418 = vmatpush3.bf16.msra.mxu1 %v4010_v33 }
 0x266   :  { %3420 = vmatprep.subr.bf16.mxu1 %v4016_v52 }
 0x269   :  { %3422 = vmatpush3.bf16.msra.mxu1 %v4016_v52  ;;  %v3255_v32 = vpop.f32.mrb[60].mxu0 }
 0x26a   :  { %3424 = vmatprep.subr.bf16.mxu1 %v4022_v55  ;;  %v1942_v34 = vpop.f32.mrb[61].mxu0 }
 0x26d   :  { %3426 = vmatpush3.bf16.msra.mxu1 %v4022_v55  ;;  %v3258_v35 = vpop.f32.mrb[62].mxu0 }
 0x26e   :  { %3091 = vmatprep.subr.mxu1 %v4026_v56  ;;  %v1952_v53 = vpop.f32.mrb[63].mxu0 }
 0x271   :  { %3092 = vmatpush3.msra.mxu1 %v4026_v56 }
 0x272   :  { %3094 = vmatmul.mubr.msk.f32.vlgmr.msra.gmra.mrb[12].mxu1 %vm652_vm2, %v2560_v39  ;;  %3099 = vmatprep.subr.mxu1 %v640_v23 }
 0x273   :  { %3096 = vmatprep.mubr.msk.f32.mxu1 %vm652_vm2, %v2561_v40  ;;  %3100 = vmatpush3.msra.mxu1 %v640_v23 }
 0x274   :  { %3139 = vmatprep.subr.mxu1 %v641_v43 }
 0x276   :  { %3097 = vmatmul.mubr.msk.f32.gmra.mrb[14].mxu1 %vm652_vm2, %v2562_v41 }
 0x345   :  { %v3095_v27 = vpop.f32.mrb[12].mxu1 }
 0x346   :  { %v1130_v44 = vpop.f32.mrb[13].mxu1 }
 0x347   :  { %3101 = vmatprep.mubr.msk.f32.mxu1 %vm852_vm3, %v1130_v44 }
 0x348   :  { %3102 = vmatmul.mubr.msk.f32.vlgmr.msra.gmra.mrb[8].mxu1 %vm852_vm3, %v3095_v27 }
 0x349   :  { %3140 = vmatpush3.msra.mxu1 %v641_v43  ;;  %v3098_v47 = vpop.f32.mrb[14].mxu1 }
 0x34a   :  { %3452 = vmatprep.subr.bf16.mxu1 %v3973_v48  ;;  %v1140_v8 = vpop.f32.mrb[15].mxu1 }
 0x34b   :  { %3104 = vmatprep.mubr.msk.f32.mxu1 %vm852_vm3, %v1140_v8 }
 0x34c   :  { %3105 = vmatmul.mubr.msk.f32.gmra.mrb[10].mxu1 %vm852_vm3, %v3098_v47 }
 0x34d   :  { %3141 = vmatprep.mubr.msk.f32.mxu1 %vm852_vm3, %v1333_v42 }
 0x350   :  { %3142 = vmatmul.mubr.msk.f32.vlgmr.msra.gmra.mrb[8].mxu1 %vm852_vm3, %v3135_v45 }
 0x351   :  { %3454 = vmatpush3.bf16.msra.mxu1 %v3973_v48  ;;  %3144 = vmatprep.mubr.msk.f32.mxu1 %vm852_vm3, %v1343_v6 }
 0x352   :  { %3456 = vmatprep.subr.bf16.mxu1 %v3989_v5 }
 0x354   :  { %3145 = vmatmul.mubr.msk.f32.gmra.mrb[10].mxu1 %vm852_vm3, %v3138_v49 }
 0x355   :  { %3458 = vmatpush3.bf16.msra.mxu1 %v3989_v5  ;;  %3173 = vmatprep.mubr.msk.f32.mxu1 %vm652_vm2, %v2583_v28 }
 0x356   :  { %3460 = vmatprep.subr.bf16.mxu1 %v4003_v51 }
 0x359   :  { %3462 = vmatpush3.bf16.msra.mxu1 %v4003_v51 }
 0x35a   :  { %3464 = vmatprep.subr.bf16.mxu1 %v4010_v33 }
 0x35d   :  { %3466 = vmatpush3.bf16.msra.mxu1 %v4010_v33 }
 0x35e   :  { %3468 = vmatprep.subr.bf16.mxu1 %v4016_v52 }
 0x361   :  { %3470 = vmatpush3.bf16.msra.mxu1 %v4016_v52 }
 0x362   :  { %3472 = vmatprep.subr.bf16.mxu1 %v4022_v55 }
 0x365   :  { %3474 = vmatpush3.bf16.msra.mxu1 %v4022_v55 }
 0x366   :  { %3171 = vmatprep.subr.mxu1 %v4026_v56 }
 0x369   :  { %3172 = vmatpush3.msra.mxu1 %v4026_v56 }
 0x36a   :  { %3174 = vmatmul.mubr.msk.f32.vlgmr.msra.gmra.mrb[16].mxu1 %vm652_vm2, %v2584_v29  ;;  %3179 = vmatprep.subr.mxu1 %v642_v30 }
 0x36b   :  { %3176 = vmatprep.mubr.msk.f32.mxu1 %vm652_vm2, %v2585_v31  ;;  %3180 = vmatpush3.msra.mxu1 %v642_v30 }
 0x36c   :  { %3219 = vmatprep.subr.mxu1 %v643_v50 }
 0x36e   :  { %3177 = vmatmul.mubr.msk.f32.gmra.mrb[18].mxu1 %vm652_vm2, %v2586_v46 }
 0x43d   :  { %v3175_v60 = vpop.f32.mrb[16].mxu1 }
 0x43e   :  { %v1536_v61 = vpop.f32.mrb[17].mxu1 }
 0x43f   :  { %3181 = vmatprep.mubr.msk.f32.mxu1 %vm852_vm3, %v1536_v61 }
 0x440   :  { %3182 = vmatmul.mubr.msk.f32.vlgmr.msra.gmra.mrb[8].mxu1 %vm852_vm3, %v3175_v60 }
 0x441   :  { %3220 = vmatpush3.msra.mxu1 %v643_v50  ;;  %v3178_v63 = vpop.f32.mrb[18].mxu1 }
 0x442   :  { %v1546_v0 = vpop.f32.mrb[19].mxu1  ;;  %3259 = vmatprep.subr.mxu1 %v644_v62 }
 0x443   :  { %3184 = vmatprep.mubr.msk.f32.mxu1 %vm852_vm3, %v1546_v0 }
 0x444   :  { %3185 = vmatmul.mubr.msk.f32.gmra.mrb[10].mxu1 %vm852_vm3, %v3178_v63 }
 0x445   :  { %3221 = vmatprep.mubr.msk.f32.mxu1 %vm852_vm3, %v4213_v26 }
 0x448   :  { %3222 = vmatmul.mubr.msk.f32.vlgmr.msra.gmra.mrb[8].mxu1 %vm852_vm3, %v4210_v25 }
 0x449   :  { %3260 = vmatpush3.msra.mxu1 %v644_v62  ;;  %3224 = vmatprep.mubr.msk.f32.mxu1 %vm852_vm3, %v1749_v7 }
 0x44a   :  { %3524 = vmatprep.subr.bf16.mxu1 %v3973_v48 }
 0x44c   :  { %3225 = vmatmul.mubr.msk.f32.gmra.mrb[10].mxu1 %vm852_vm3, %v3218_v11 }
 0x44d   :  { %3261 = vmatprep.mubr.msk.f32.mxu1 %vm852_vm3, %v1942_v34 }
 0x450   :  { %3262 = vmatmul.mubr.msk.f32.vlgmr.msra.gmra.mrb[8].mxu1 %vm852_vm3, %v3255_v32 }
 0x451   :  { %3526 = vmatpush3.bf16.msra.mxu1 %v3973_v48  ;;  %3264 = vmatprep.mubr.msk.f32.mxu1 %vm852_vm3, %v1952_v53  ;;  %v2620_v48 = vld [vmem:[%s4345_s3 + $0xe8] sm:$0xff] }
 0x452   :  { %3528 = vmatprep.subr.bf16.mxu1 %v3989_v5 }
 0x454   :  { %3265 = vmatmul.mubr.msk.f32.gmra.mrb[10].mxu1 %vm852_vm3, %v3258_v35 }
 0x455   :  { %3530 = vmatpush3.bf16.msra.mxu1 %v3989_v5  ;;  %3293 = vmatprep.mubr.msk.f32.mxu1 %vm652_vm2, %v2619_v1  ;;  %v645_v5 = vld [vmem:[%s4347_s4 + $0x38] sm:$0xff] }
 0x456   :  { %3532 = vmatprep.subr.bf16.mxu1 %v4003_v51 }
 0x459   :  { %3534 = vmatpush3.bf16.msra.mxu1 %v4003_v51  ;;  %v2621_v51 = vld [vmem:[%s4345_s3 + $0xf0] sm:$0xff] }
 0x45a   :  { %3536 = vmatprep.subr.bf16.mxu1 %v4010_v33 }
 0x45d   :  { %3538 = vmatpush3.bf16.msra.mxu1 %v4010_v33  ;;  %v2622_v33 = vld [vmem:[%s4345_s3 + $0xf8] sm:$0xff] }
 0x45e   :  { %3540 = vmatprep.subr.bf16.mxu1 %v4016_v52 }
 0x461   :  { %3542 = vmatpush3.bf16.msra.mxu1 %v4016_v52  ;;  %v3335_v52 = vpop.f32.mrb[64].mxu0 }
 0x462   :  { %3544 = vmatprep.subr.bf16.mxu1 %v4022_v55  ;;  %v2348_v2 = vpop.f32.mrb[65].mxu0 }
 0x463   :  { %3341 = vmatprep.mubr.msk.f32.mxu0 %vm852_vm3, %v2348_v2 }
 0x465   :  { %3546 = vmatpush3.bf16.msra.mxu1 %v4022_v55  ;;  %v646_v55 = vld [vmem:[%s4347_s4 + $0x40] sm:$0xff] }
 0x466   :  { %3291 = vmatprep.subr.mxu1 %v4026_v56  ;;  %3339 = vmatprep.subr.mxu0 %v646_v55 }
 0x467   :  { %3340 = vmatpush3.msra.mxu0 %v646_v55 }
 0x468   :  { %3342 = vmatmul.mubr.msk.f32.vlgmr.msra.gmra.mrb[68].mxu0 %vm852_vm3, %v3335_v52 }
 0x469   :  { %3292 = vmatpush3.msra.mxu1 %v4026_v56  ;;  %v3338_v56 = vpop.f32.mrb[66].mxu0 }
 0x46a   :  { %3294 = vmatmul.mubr.msk.f32.vlgmr.msra.gmra.mrb[20].mxu1 %vm652_vm2, %v2620_v48  ;;  %3299 = vmatprep.subr.mxu1 %v645_v5  ;;  %v2358_v4 = vpop.f32.mrb[67].mxu0 }
 0x46b   :  { %3296 = vmatprep.mubr.msk.f32.mxu1 %vm652_vm2, %v2621_v51  ;;  %3300 = vmatpush3.msra.mxu1 %v645_v5 }
 0x46c   :  { %3571 = vmatprep.subr.mxu1 %v646_v55 }
 0x46e   :  { %3297 = vmatmul.mubr.msk.f32.gmra.mrb[22].mxu1 %vm652_vm2, %v2622_v33 }
 0x53b   :  { %v3343_v16 = vpop.f32.mrb[68].mxu0 }
 0x53c   :  { %v2445_v13 = vpop.f32.mrb[69].mxu0 }
 0x53d   :  { %v3295_v9 = vpop.f32.mrb[20].mxu1 }
 0x53e   :  { %v2145_v10 = vpop.f32.mrb[21].mxu1 }
 0x53f   :  { %3301 = vmatprep.mubr.msk.f32.mxu1 %vm852_vm3, %v2145_v10 }
 0x540   :  { %3302 = vmatmul.mubr.msk.f32.vlgmr.msra.gmra.mrb[8].mxu1 %vm852_vm3, %v3295_v9 }
 0x541   :  { %3572 = vmatpush3.msra.mxu1 %v646_v55  ;;  %v3298_v12 = vpop.f32.mrb[22].mxu1 }
 0x542   :  { %v2155_v14 = vpop.f32.mrb[23].mxu1 }
 0x543   :  { %3304 = vmatprep.mubr.msk.f32.mxu1 %vm852_vm3, %v2155_v14 }
 0x544   :  { %3305 = vmatmul.mubr.msk.f32.gmra.mrb[10].mxu1 %vm852_vm3, %v3298_v12 }
 0x545   :  { %3344 = vmatprep.mubr.msk.f32.mxu1 %vm852_vm3, %v2358_v4 }
 0x54c   :  { %3345 = vmatmul.mubr.msk.f32.vlgmr.msra.gmra.mrb[10].mxu1 %vm852_vm3, %v3338_v56 }
 0x613   :  { %v3303_v15 = vpop.f32.mrb[8].mxu1 }
 0x614   :  { %v3573_v18 = vadd.f32 %v3343_v16, %v3303_v15  ;;  %v2242_v20 = vpop.f32.mrb[9].mxu1 }
 0x615   :  { %v3574_v22 = vadd.f32 %v2445_v13, %v2242_v20 }
 0x617   :  { %v2468_v36 = vmax.f32 %v3574_v22, %v3573_v18 }
 0x61f   :  { %v3346_v37 = vpop.f32.mrb[10].mxu1 }
 0x620   :  { %v2455_v17 = vpop.f32.mrb[11].mxu1 }
 0x621   :  { %v2469_v19 = vmax.f32 %v2455_v17, %v3346_v37 }
 0x623   :  { %v2470_v21 = vmax.f32 %v2468_v36, %v2469_v19 }
 0x625   :  { %v2477_v39 = vadd.f32 %v2643_v38, %v2470_v21 }
 0x627   :  { %3631 = vtanh.f32 %v2477_v39 }
 0x631   :  { %v3632_v23 = vpop.eup %3631 }
 0x632   :  { %2480 = vst.msk [vmem:[%s4349_s6] sm:$0xff] %vm2479_vm4, %v3632_v23 }

</bundles_post_ra>
